<compile_context>
chip_gen: v5e
topology: v5e:2x2
jax: 0.10.0
libtpu: 0.0.40
codegen_flags: <defaults>
</compile_context>

<pallas_src>
import functools

import jax
import jax.numpy as jnp
import numpy as np
from jax.experimental import pallas as pl
from jax.experimental.pallas import tpu as pltpu


def _stat_pool_kernel(x_ref, mean_ref, std_ref, k_ref, s_ref, ss_ref, *,
                      n_total, t_tile, num_t, eps):
    """Grid = (B, c_blocks, t_blocks); time (reduction) axis is innermost/arbitrary."""
    t = pl.program_id(2)
    last = num_t - 1
    tail = n_total - last * t_tile          # valid lanes in the last block (static)
    ragged = tail != t_tile                 # static python bool

    x = x_ref[0].astype(jnp.float32)        # (c_tile, t_tile) - f32 accumulation

    def accumulate(mask, n_block):
        # First block of each (b, c) pair: set the shift K = block-0 per-channel mean
        # and zero the running sums.
        @pl.when(t == 0)
        def _init():
            xv = x if mask is None else jnp.where(mask, x, 0.0)
            bsum = jnp.sum(xv, axis=-1, keepdims=True)              # (c_tile, 1)
            k_ref[...] = bsum * jnp.float32(1.0 / n_block)
            s_ref[...] = jnp.zeros_like(s_ref)
            ss_ref[...] = jnp.zeros_like(ss_ref)

        k = k_ref[...]                                              # (c_tile, 1)
        d = x - k
        if mask is not None:
            d = jnp.where(mask, d, 0.0)
        # In-register lane reductions; only two tiny (c_tile, 1) VMEM updates per step.
        s_ref[...] += jnp.sum(d, axis=-1, keepdims=True)
        ss_ref[...] += jnp.sum(d * d, axis=-1, keepdims=True)

    if ragged:
        # Full blocks pay no masking cost; only the last (ragged) block is masked.
        @pl.when(t != last)
        def _full():
            accumulate(None, t_tile)

        @pl.when(t == last)
        def _tail():
            col = jax.lax.broadcasted_iota(jnp.int32, x.shape, 1)
            accumulate(col < tail, tail)
    else:
        accumulate(None, t_tile)

    @pl.when(t == last)
    def _finalize():
        inv_n = jnp.float32(1.0 / n_total)
        m_off = s_ref[...] * inv_n                   # E[x - K]  (tiny since K ~ mean)
        mean = k_ref[...] + m_off
        var = ss_ref[...] * inv_n - m_off * m_off    # E[(x-K)^2] - E[x-K]^2
        # Same clamp as the PyTorch module (var <= eps -> eps); also guards any tiny
        # negative value from f32 rounding.
        var = jnp.where(var <= eps, jnp.float32(eps), var)
        mean_ref[0] = mean.astype(mean_ref.dtype)
        std_ref[0] = jnp.sqrt(var).astype(std_ref.dtype)


def statistic_pooling(xs_pad, eps=1e-12, *, max_t_tile=None):
    """Pallas TPU implementation of funasr StatisticPooling.forward (ilens=None path)."""
    # TODO(synk): masked (ilens is not None) path not implemented; this matches
    # forward(xs_pad, ilens=None) where the mask is all ones.
    B, C, T = xs_pad.shape
    out_dtype = xs_pad.dtype
    itemsize = jnp.dtype(xs_pad.dtype).itemsize

    # Channel blocking (sublane axis): split only when it helps megacore balance
    # (odd batch count on a 2-TC chip) and every block stays a multiple of 8 sublanes.
    if (B % 2 != 0) and C >= 16 and (C % 16 == 0):
        num_c, c_tile = 2, C // 2
    else:
        num_c, c_tile = 1, C

    # Generation-aware VMEM budget (64 MiB on v7x, 128 MiB on v5e/v6e).
    vmem_cap = 64 << 20
    try:
        vmem_cap = int(getattr(pltpu.get_tpu_info(), "vmem_capacity_bytes", vmem_cap))
    except Exception:
        pass
    in_block_budget = max(4 << 20, min(16 << 20, vmem_cap // 8))   # per buffered input block

    # Time tile (lane axis): a multiple of 128, or the full T when it already fits.
    lanes = (in_block_budget // max(c_tile * itemsize, 1)) // 128 * 128
    lanes = max(lanes, 128)
    if max_t_tile is not None:
        lanes = max(128, min(lanes, (max_t_tile // 128) * 128))
    if T <= lanes:
        t_tile, num_t = T, 1
    else:
        t_tile, num_t = lanes, int(pl.cdiv(T, lanes))

    # Scoped VMEM limit derived from the actual buffers (double-buffered input + tiny
    # scratch/outputs), not a fixed cap.
    in_block_bytes = c_tile * t_tile * itemsize
    pad_rows = ((c_tile + 7) // 8) * 8
    small_bytes = 3 * pad_rows * 128 * 4 + 2 * 2 * pad_rows * 128 * itemsize
    vmem_needed = 2 * in_block_bytes + small_bytes + (1 << 20)
    vmem_limit = int(min(max(2 * vmem_needed, 16 << 20), (vmem_cap * 9) // 10))

    kernel = functools.partial(
        _stat_pool_kernel, n_total=T, t_tile=t_tile, num_t=num_t, eps=float(eps))

    mean3, std3 = pl.pallas_call(
        kernel,
        out_shape=(
            jax.ShapeDtypeStruct((B, C, 1), out_dtype),
            jax.ShapeDtypeStruct((B, C, 1), out_dtype),
        ),
        grid_spec=pltpu.PrefetchScalarGridSpec(
            num_scalar_prefetch=0,
            grid=(B, num_c, num_t),
            in_specs=[pl.BlockSpec((1, c_tile, t_tile), lambda b, c, t: (b, c, t))],
            out_specs=(
                pl.BlockSpec((1, c_tile, 1), lambda b, c, t: (b, c, 0)),
                pl.BlockSpec((1, c_tile, 1), lambda b, c, t: (b, c, 0)),
            ),
            scratch_shapes=[
                pltpu.VMEM((c_tile, 1), jnp.float32),   # K (shift = block-0 mean)
                pltpu.VMEM((c_tile, 1), jnp.float32),   # sum(x - K)
                pltpu.VMEM((c_tile, 1), jnp.float32),   # sum((x - K)^2)
            ],
        ),
        compiler_params=pltpu.CompilerParams(
            dimension_semantics=("parallel", "parallel", "arbitrary"),
            vmem_limit_bytes=vmem_limit,
        ),
    )(xs_pad)

    return jnp.concatenate([mean3[:, :, 0], std3[:, :, 0]], axis=1)   # (B, 2*C)


def _reference(xs_pad, eps=1e-12):
    x = xs_pad.astype(jnp.float32)
    mean = jnp.mean(x, axis=2)
    var = jnp.mean((x - mean[:, :, None]) ** 2, axis=2)
    var = jnp.where(var <= eps, eps, var)
    return jnp.concatenate([mean, jnp.sqrt(var)], axis=1).astype(xs_pad.dtype)


if __name__ == "__main__":
    key = jax.random.PRNGKey(0)
    k1, k2, k3 = jax.random.split(key, 3)

    # Case 1: module-default small shape (B, C, T) = (2, 4, 16), f32, single time tile.
    x1 = jax.random.normal(k1, (2, 4, 16), dtype=jnp.float32)
    out1 = jax.block_until_ready(statistic_pooling(x1))
    ref1 = jax.block_until_ready(_reference(x1))
    np.testing.assert_allclose(np.asarray(out1), np.asarray(ref1), rtol=1e-5, atol=1e-5)

    # Case 2: odd batch (channel split), multi-tile ragged T, bf16 input, DC offset
    # (stresses the shifted-variance numerics).
    x2 = (5.0 + jax.random.normal(k2, (1, 16, 300), dtype=jnp.float32)).astype(jnp.bfloat16)
    out2 = jax.block_until_ready(statistic_pooling(x2, max_t_tile=128))
    ref2 = jax.block_until_ready(_reference(x2))
    np.testing.assert_allclose(np.asarray(out2.astype(jnp.float32)),
                               np.asarray(ref2.astype(jnp.float32)),
                               rtol=3e-2, atol=3e-2)

    # Case 3: channels not a multiple of 8 (full-dim channel block), ragged T tail, f32.
    x3 = jax.random.normal(k3, (3, 6, 200), dtype=jnp.float32) * 2.0 + 1.0
    out3 = jax.block_until_ready(statistic_pooling(x3, max_t_tile=128))
    ref3 = jax.block_until_ready(_reference(x3))
    np.testing.assert_allclose(np.asarray(out3), np.asarray(ref3), rtol=1e-5, atol=1e-5)

    print("KERNEL_OK")
</pallas_src>

<mosaic_0001>
module attributes {stable_mosaic.version = 11 : i64} {
  func.func @_stat_pool_kernel(%arg0: i32, %arg1: i32, %arg2: i32, %arg3: memref<1x4x16xf32, #tpu.memory_space<vmem>>, %arg4: memref<1x4x1xf32, #tpu.memory_space<vmem>>, %arg5: memref<1x4x1xf32, #tpu.memory_space<vmem>>, %arg6: memref<4x1xf32, #tpu.memory_space<vmem>>, %arg7: memref<4x1xf32, #tpu.memory_space<vmem>>, %arg8: memref<4x1xf32, #tpu.memory_space<vmem>>) attributes {dimension_semantics = [#tpu.dimension_semantics<parallel>, #tpu.dimension_semantics<parallel>, #tpu.dimension_semantics<arbitrary>], iteration_bounds = array<i64: 2, 1, 1>, scalar_prefetch = 0 : i64, scratch_operands = 3 : i64, tpu.core_type = #tpu.core_type<tc>, window_params = [{transform_indices = @transform_0, window_bounds = array<i64: 1, 4, 16>}, {transform_indices = @transform_1, window_bounds = array<i64: 1, 4, 1>}, {transform_indices = @transform_2, window_bounds = array<i64: 1, 4, 1>}]} {
    %c0 = arith.constant 0 : index
    %c0_0 = arith.constant 0 : index
    %c0_1 = arith.constant 0 : index
    %0 = vector.load %arg3[%c0, %c0_0, %c0_1] : memref<1x4x16xf32, #tpu.memory_space<vmem>>, vector<1x4x16xf32>
    %1 = vector.shape_cast %0 : vector<1x4x16xf32> to vector<4x16xf32>
    %c0_i32 = arith.constant 0 : i32
    %2 = arith.cmpi eq, %arg2, %c0_i32 : i32
    %3 = arith.extui %2 : i1 to i32
    %c0_i32_2 = arith.constant 0 : i32
    %4 = arith.cmpi ne, %3, %c0_i32_2 : i32
    scf.if %4 {
      %cst_16 = arith.constant dense<0.000000e+00> : vector<4xf32>
      %22 = vector.multi_reduction <add>, %1, %cst_16 [1] : vector<4x16xf32> to vector<4xf32>
      %23 = vector.shape_cast %22 : vector<4xf32> to vector<4x1xf32>
      %cst_17 = arith.constant 6.250000e-02 : f32
      %24 = vector.broadcast %cst_17 : f32 to vector<4x1xf32>
      %25 = arith.mulf %23, %24 : vector<4x1xf32>
      %c0_18 = arith.constant 0 : index
      %c0_19 = arith.constant 0 : index
      %26 = vector.load %arg6[%c0_18, %c0_19] : memref<4x1xf32, #tpu.memory_space<vmem>>, vector<4x1xf32>
      tpu.vector_store %arg6[%c0_18, %c0_19], %25 {strides = array<i32>} : memref<4x1xf32, #tpu.memory_space<vmem>>, vector<4x1xf32>,
      %cst_20 = arith.constant 0.000000e+00 : f32
      %27 = vector.broadcast %cst_20 : f32 to vector<4x1xf32>
      %c0_21 = arith.constant 0 : index
      %c0_22 = arith.constant 0 : index
      %28 = vector.load %arg7[%c0_21, %c0_22] : memref<4x1xf32, #tpu.memory_space<vmem>>, vector<4x1xf32>
      tpu.vector_store %arg7[%c0_21, %c0_22], %27 {strides = array<i32>} : memref<4x1xf32, #tpu.memory_space<vmem>>, vector<4x1xf32>,
      %cst_23 = arith.constant 0.000000e+00 : f32
      %29 = vector.broadcast %cst_23 : f32 to vector<4x1xf32>
      %c0_24 = arith.constant 0 : index
      %c0_25 = arith.constant 0 : index
      %30 = vector.load %arg8[%c0_24, %c0_25] : memref<4x1xf32, #tpu.memory_space<vmem>>, vector<4x1xf32>
      tpu.vector_store %arg8[%c0_24, %c0_25], %29 {strides = array<i32>} : memref<4x1xf32, #tpu.memory_space<vmem>>, vector<4x1xf32>,
    } else {
    }
    %c0_3 = arith.constant 0 : index
    %c0_4 = arith.constant 0 : index
    %5 = vector.load %arg6[%c0_3, %c0_4] : memref<4x1xf32, #tpu.memory_space<vmem>>, vector<4x1xf32>
    %6 = vector.broadcast %5 : vector<4x1xf32> to vector<4x16xf32>
    %7 = arith.subf %1, %6 : vector<4x16xf32>
    %c0_5 = arith.constant 0 : index
    %c0_6 = arith.constant 0 : index
    %8 = vector.load %arg7[%c0_5, %c0_6] : memref<4x1xf32, #tpu.memory_space<vmem>>, vector<4x1xf32>
    %cst = arith.constant dense<0.000000e+00> : vector<4xf32>
    %9 = vector.multi_reduction <add>, %7, %cst [1] : vector<4x16xf32> to vector<4xf32>
    %10 = vector.shape_cast %9 : vector<4xf32> to vector<4x1xf32>
    %11 = arith.addf %8, %10 : vector<4x1xf32>
    %c0_7 = arith.constant 0 : index
    %c0_8 = arith.constant 0 : index
    %12 = vector.load %arg7[%c0_7, %c0_8] : memref<4x1xf32, #tpu.memory_space<vmem>>, vector<4x1xf32>
    tpu.vector_store %arg7[%c0_7, %c0_8], %11 {strides = array<i32>} : memref<4x1xf32, #tpu.memory_space<vmem>>, vector<4x1xf32>,
    %c0_9 = arith.constant 0 : index
    %c0_10 = arith.constant 0 : index
    %13 = vector.load %arg8[%c0_9, %c0_10] : memref<4x1xf32, #tpu.memory_space<vmem>>, vector<4x1xf32>
    %14 = arith.mulf %7, %7 : vector<4x16xf32>
    %cst_11 = arith.constant dense<0.000000e+00> : vector<4xf32>
    %15 = vector.multi_reduction <add>, %14, %cst_11 [1] : vector<4x16xf32> to vector<4xf32>
    %16 = vector.shape_cast %15 : vector<4xf32> to vector<4x1xf32>
    %17 = arith.addf %13, %16 : vector<4x1xf32>
    %c0_12 = arith.constant 0 : index
    %c0_13 = arith.constant 0 : index
    %18 = vector.load %arg8[%c0_12, %c0_13] : memref<4x1xf32, #tpu.memory_space<vmem>>, vector<4x1xf32>
    tpu.vector_store %arg8[%c0_12, %c0_13], %17 {strides = array<i32>} : memref<4x1xf32, #tpu.memory_space<vmem>>, vector<4x1xf32>,
    %c0_i32_14 = arith.constant 0 : i32
    %19 = arith.cmpi eq, %arg2, %c0_i32_14 : i32
    %20 = arith.extui %19 : i1 to i32
    %c0_i32_15 = arith.constant 0 : i32
    %21 = arith.cmpi ne, %20, %c0_i32_15 : i32
    scf.if %21 {
      %c0_16 = arith.constant 0 : index
      %c0_17 = arith.constant 0 : index
      %22 = vector.load %arg7[%c0_16, %c0_17] : memref<4x1xf32, #tpu.memory_space<vmem>>, vector<4x1xf32>
      %cst_18 = arith.constant 6.250000e-02 : f32
      %23 = vector.broadcast %cst_18 : f32 to vector<4x1xf32>
      %24 = arith.mulf %22, %23 : vector<4x1xf32>
      %c0_19 = arith.constant 0 : index
      %c0_20 = arith.constant 0 : index
      %25 = vector.load %arg6[%c0_19, %c0_20] : memref<4x1xf32, #tpu.memory_space<vmem>>, vector<4x1xf32>
      %26 = arith.addf %25, %24 : vector<4x1xf32>
      %c0_21 = arith.constant 0 : index
      %c0_22 = arith.constant 0 : index
      %27 = vector.load %arg8[%c0_21, %c0_22] : memref<4x1xf32, #tpu.memory_space<vmem>>, vector<4x1xf32>
      %cst_23 = arith.constant 6.250000e-02 : f32
      %28 = vector.broadcast %cst_23 : f32 to vector<4x1xf32>
      %29 = arith.mulf %27, %28 : vector<4x1xf32>
      %30 = arith.mulf %24, %24 : vector<4x1xf32>
      %31 = arith.subf %29, %30 : vector<4x1xf32>
      %cst_24 = arith.constant 9.99999996E-13 : f32
      %32 = vector.broadcast %cst_24 : f32 to vector<4x1xf32>
      %33 = arith.cmpf ole, %31, %32 : vector<4x1xf32>
      %cst_25 = arith.constant 9.99999996E-13 : f32
      %34 = vector.broadcast %cst_25 : f32 to vector<4x1xf32>
      %35 = arith.select %33, %34, %31 : vector<4x1xi1>, vector<4x1xf32>
      %c0_26 = arith.constant 0 : index
      %c0_27 = arith.constant 0 : index
      %c0_28 = arith.constant 0 : index
      %36 = vector.load %arg4[%c0_26, %c0_27, %c0_28] : memref<1x4x1xf32, #tpu.memory_space<vmem>>, vector<1x4x1xf32>
      %37 = vector.shape_cast %36 : vector<1x4x1xf32> to vector<4x1xf32>
      %38 = vector.shape_cast %26 : vector<4x1xf32> to vector<1x4x1xf32>
      tpu.vector_store %arg4[%c0_26, %c0_27, %c0_28], %38 {strides = array<i32>} : memref<1x4x1xf32, #tpu.memory_space<vmem>>, vector<1x4x1xf32>,
      %39 = math.sqrt %35 : vector<4x1xf32>
      %c0_29 = arith.constant 0 : index
      %c0_30 = arith.constant 0 : index
      %c0_31 = arith.constant 0 : index
      %40 = vector.load %arg5[%c0_29, %c0_30, %c0_31] : memref<1x4x1xf32, #tpu.memory_space<vmem>>, vector<1x4x1xf32>
      %41 = vector.shape_cast %40 : vector<1x4x1xf32> to vector<4x1xf32>
      %42 = vector.shape_cast %39 : vector<4x1xf32> to vector<1x4x1xf32>
      tpu.vector_store %arg5[%c0_29, %c0_30, %c0_31], %42 {strides = array<i32>} : memref<1x4x1xf32, #tpu.memory_space<vmem>>, vector<1x4x1xf32>,
    } else {
    }
    return
  }
  func.func @transform_0(%arg0: i32, %arg1: i32, %arg2: i32) -> (i32, i32, i32) {
    %c0_i32 = arith.constant 0 : i32
    return %arg0, %arg1, %arg2 : i32, i32, i32
  }
  func.func @transform_1(%arg0: i32, %arg1: i32, %arg2: i32) -> (i32, i32, i32) {
    %c0_i32 = arith.constant 0 : i32
    %c0_i32_0 = arith.constant 0 : i32
    return %arg0, %arg1, %c0_i32 : i32, i32, i32
  }
  func.func @transform_2(%arg0: i32, %arg1: i32, %arg2: i32) -> (i32, i32, i32) {
    %c0_i32 = arith.constant 0 : i32
    %c0_i32_0 = arith.constant 0 : i32
    return %arg0, %arg1, %c0_i32 : i32, i32, i32
  }
}

</mosaic_0001>

<bundles_post_ra>
// kernel: tpu_custom_call.1
= control target key start
LH: loop header
LB: loop body
LE: loop exit
PB: predicated region body
PF: predicated region fallthrough
CT: control target
= control target key end

     0   :  { %8 = vsyncpa [#allocation6], 0  ;;  %s677_s0 = inlined_call_operand.hbm [shape: f32[2,4,16], index: 0, kind: input, shape index: {}]   ;;  %s678_s1 = inlined_call_operand.vmem [shape: f32[2,4,1], index: 1, kind: output, shape index: {0}]   ;;  %s679_s2 = inlined_call_operand.vmem [shape: f32[2,4,1], index: 2, kind: output, shape index: {1}]  }
   0x1   :  { %10 = vsyncpa [#allocation6 + $0x1], 0  ;;  %s576_s9 = smov 0   ;;  %s578_s10 = smov 0  }
   0x2   :  { %s580_s11 = smov 0   ;;  %s582_s12 = smov 0  }
   0x3   :  { %s584_s13 = smov 0   ;;  %s586_s14 = smov 0  }
   0x4 LB: > { %s405_s15 = sadd.s32 4294967295, %s557_s14   ;;  %s35_s16 = sadd.s32 1, %s553_s13  ;;  %s557_s14 = sphi %s586_s14, %s16_s14   ;;  %s553_s13 = sphi %s584_s13, %s686_s13   ;;  %s549_s12 = sphi %s582_s12, %s685_s12   ;;  %s545_s11 = sphi %s580_s11, %s684_s11   ;;  %s541_s10 = sphi %s578_s10, %s683_s10   ;;  %s537_s9 = sphi %s576_s9, %s682_s9  }
   0x5   : > { %p37_p0 = scmp.ge.s32.totalorder %s35_s16, 2  ;;  %s46_s17 = sadd.s32 1, %s545_s11 }
   0x6   : > { %p53_p1 = scmp.ne.s32.totalorder %s545_s11, %s541_s10  ;;  %p54_p2 = scmp.eq.s32.totalorder %s557_s14, 0 }
   0x7   : > { %s688_s16 = smov (%p37_p0, %s35_s16), 0  ;;  %p59_p4 = scmp.ne.s32.totalorder %s541_s10, %s537_s9 }
   0x8   : > { %p612_p3 = por %p54_p2, %p53_p1  ;;  %s39_s19 = ssub.s32 %s553_s13, %s688_s16 }
   0x9   : > { %p60_p5 = scmp.eq.s32.totalorder %s405_s15, 0  ;;  %p44_p6 = scmp.eq.s32.totalorder %s39_s19, 0 }
   0xa   : > { %p423_p8 = scmp.lt.s32.totalorder %s557_s14, 2  ;;  %s139_s22 = sand.u32 1, %s545_s11  }
   0xb   : > { %p619_p7 = por %p60_p5, %p59_p4  ;;  %s410_s23 = sshll.u32 %s553_s13, 2 }
   0xc   : > { %s625_s21 = scalar_select %p44_p6, %s545_s11, %s46_s17  }
   0xd   : > { %s409_s24 = sshll.u32 %s139_s22, 2  ;;  %s149_s27 = scalar_lea.hbm %s677_s0, %s410_s23 }
   0xe   : > { %s151_s28 = sshll.u32 %s149_s27, 4  ;;  %s143_s29 = scalar_lea.vmem [#allocation5], %s409_s24  ;;  %s152_s28 = int_to_ptr.hbm [resolvable:$true] %s151_s28 }
   0xf   : > { %s153_s30 = sshll.u32 %s143_s29, 4  ;;  %p420_p9 = pnand %p423_p8, %p612_p3  ;;  %s154_s30 = int_to_ptr.vmem [resolvable:$true] %s153_s30 }
  0x10   : > { %p411_p10 = scmp.ge.s32.totalorder %s557_s14, 1  ;;  %p158_p11 = scmp.lt.s32.totalorder %s557_s14, 3 }
  0x11   : > { %s140_s3 = scalar_lea.sflag [#allocation6], %s139_s22 }
  0x12   : > { %422 = dma.hbm_to_vmem [thread:$0]  (!%p420_p9), %s152_s28, 64, %s154_s30, %s140_s3  }
  0x13   : > { %p159_p12 = pnand %p411_p10, %p158_p11 }
  0x14   : > { %s164_s4 = sand.u32 (!%p159_p12), 1, %s541_s10  }
  0x15   : > { %162 = sbr.rel (%p159_p12) target bundleno = 435 (0x1b3), region = 24  ;;  %s412_s5 = sshll.u32 (!%p159_p12), %s164_s4, 2 }
  0x16   : > { %s165_s6 = scalar_lea.sflag (!%p159_p12), [#allocation6], %s164_s4  ;;  %s168_s7 = scalar_lea.vmem (!%p159_p12), [#allocation5], %s412_s5 }
  0x1a   : > { %532 = dma.done.wait (%p619_p7), %s165_s6, 64  }
  0x1b   : > { %534 = vsyncadd (%p619_p7), %s165_s6, 4294967232  ;;  %vm218_vm0 = vcmask 125952   ;;  %v213_v0 = vld [vmem:[%s168_s7] sm:$0xf]  ;;  %v559_v2 = vmov 0   ;;  %vm223_vm1 = vcmask 3072  }
  0x1c   : > { %v219_v1 = vsel %vm218_vm0, %v213_v0, 0.0  ;;  %474 = vset.pattern.permute.xlu0 %v559_v2  ;;  %v560_v6 = vmov 0.0   ;;  %p199_p13 = scmp.lt.s32.totalorder %s549_s12, 1 }
  0x1d   : > { %220 = vadd.xlane.f32.xlu0 %v219_v1  ;;  %225 = vst.msk [vmem:[#allocation3] sm:$0xf] %vm223_vm1, %v560_v6 }
  0x1e   : > { %226 = vst.msk [vmem:[#allocation4] sm:$0xf] %vm223_vm1, %v560_v6  ;;  %s690_s12 = smov (!%p199_p13, %s549_s12), 1 }
  0x1f   : > { %s413_s8 = sshll.u32 %s690_s12, 2 }
  0x20   : > { %s205_s17 = scalar_lea.vmem %s678_s1, %s413_s8  ;;  %s212_s19 = scalar_lea.vmem %s679_s2, %s413_s8 }
  0x24   : > { %v234_v12 = vld [vmem:[#allocation3] sm:$0xf] }
  0x25   : > { %v242_v15 = vld [vmem:[#allocation4] sm:$0xf] }
  0x90   : > { %v221_v3 = vpop.xlane.xlu0 %220 }
  0x91   : > { %v222_v4 = vmul.f32 0.0625, %v221_v3 }
  0x93   : > { %224 = vst.msk [vmem:[#allocation2] sm:$0xf] %vm223_vm1, %v222_v4 }
  0x9a   : > { %v227_v5 = vld [vmem:[#allocation2] sm:$0xf] }
  0x9b   : > { %230 = vperm.xlu0 %474, %v227_v5   ;;  %v254_v20 = vld [vmem:[#allocation2] sm:$0xf] }
 0x10d   : > { %v231_v7 = vpop.permute.xlu0 %230 }
 0x10e   : > { %v233_v8 = vsub.f32 %v213_v0, %v231_v7 }
 0x110   : > { %v236_v9 = vsel %vm218_vm0, %v233_v8, 0.0  ;;  %v243_v10 = vmul.f32 %v233_v8, %v233_v8 }
 0x111   : > { %237 = vadd.xlane.f32.xlu1 %v236_v9 }
 0x112   : > { %v244_v11 = vsel %vm218_vm0, %v243_v10, 0.0 }
 0x119   : > { %245 = vadd.xlane.f32.xlu1 %v244_v11 }
 0x184   : > { %v238_v13 = vpop.xlane.xlu1 %237 }
 0x185   : > { %v239_v14 = vadd.f32 %v238_v13, %v234_v12 }
 0x187   : > { %241 = vst.msk [vmem:[#allocation3] sm:$0xf] %vm223_vm1, %v239_v14 }
 0x18c   : > { %v246_v16 = vpop.xlane.xlu1 %245 }
 0x18d   : > { %v247_v17 = vadd.f32 %v246_v16, %v242_v15 }
 0x18e   : > { %v252_v18 = vld [vmem:[#allocation3] sm:$0xf] }
 0x18f   : > { %v253_v19 = vmul.f32 0.0625, %v252_v18  ;;  %248 = vst.msk [vmem:[#allocation4] sm:$0xf] %vm223_vm1, %v247_v17 }
 0x191   : > { %v255_v21 = vadd.f32 %v254_v20, %v253_v19  ;;  %v258_v23 = vmul.f32 %v253_v19, %v253_v19 }
 0x193   : > { %262 = vst.msk [vmem:[%s205_s17] sm:$0xf] %vm223_vm1, %v255_v21 }
 0x196   : > { %v256_v22 = vld [vmem:[#allocation4] sm:$0xf] }
 0x197   : > { %v257_v24 = vmul.f32 0.0625, %v256_v22 }
 0x199   : > { %v259_v25 = vsub.f32 %v257_v24, %v258_v23 }
 0x19b   : > { %vm260_vm2 = vcmp.le.f32.partialorder %v259_v25, 1e-12 }
 0x19c   : > { %v261_v26 = vsel %vm260_vm2, 1e-12, %v259_v25 }
 0x19d   : > { %475 = vrsqrt.f32 %v261_v26  ;;  %vm270_vm3 = vcmp.eq.f32.partialorder %v261_v26, inf  ;;  %v273_v34 = vand.u32 2147483648, %v261_v26  ;;  %vm272_vm4 = vcmp.eq.f32.partialorder %v261_v26, 0.0 }
 0x1a3   : > { %v476_v27 = vpop.eup %475 }
 0x1a4   : > { %v264_v28 = vmul.f32 %v476_v27, %v261_v26 }
 0x1a6   : > { %v265_v29 = vmul.f32 %v476_v27, %v264_v28 }
 0x1a8   : > { %v266_v30 = vmul.f32 0.5, %v265_v29 }
 0x1aa   : > { %v267_v31 = vsub.f32 1.5, %v266_v30 }
 0x1ac   : > { %v268_v32 = vmul.f32 %v476_v27, %v267_v31 }
 0x1ae   : > { %v269_v33 = vmul.f32 %v268_v32, %v261_v26 }
 0x1b0   : > { %v271_v35 = vsel %vm270_vm3, %v261_v26, %v269_v33 }
 0x1b1   : > { %v274_v36 = vsel %vm272_vm4, %v273_v34, %v271_v35 }
 0x1b2   : > { %275 = vst.msk [vmem:[%s212_s19] sm:$0xf] %vm223_vm1, %v274_v36 }
 0x1b3 PF: > { %s16_s14 = sadd.s32 1, %s557_s14   ;;  %s682_s9 = smov %s541_s10 }
 0x1b4   : > { %p13_p0 = scmp.ge.s32.totalorder %s16_s14, 4   ;;  %s683_s10 = smov %s545_s11 }
 0x1b5   : > { %s684_s11 = smov %s625_s21  ;;  %s685_s12 = smov %s553_s13 }
 0x1b6   : > { %s686_s13 = smov %s688_s16  ;;  %15 = sbr.rel (!%p13_p0) target bundleno = 4 (0x4), region = 84 }
 0x1bb   :  { %321 = vsyncpa [#allocation6], 1 }
 0x1bc   :  { %323 = vsyncpa [#allocation6 + $0x1], 1 }

</bundles_post_ra>
